<compile_context>
chip_gen: v7x
topology: tpu7x:2x2x1
jax: 0.10.0
libtpu: 0.0.40
codegen_flags: <defaults>
</compile_context>

<pallas_src>
import functools

import jax
import jax.numpy as jnp
from jax.experimental import pallas as pl
from jax.experimental.pallas import tpu as pltpu


def _round_up(a, m):
    return (a + m - 1) // m * m


def _vmem_budget_bytes():
    """Chip-aware VMEM limit + block budget (works on v5e/v6e's 128 MiB and
    v7x's 64 MiB; conservative fallback if the query is unavailable)."""
    try:
        cap = int(pltpu.get_tpu_info().vmem_capacity_bytes)
    except Exception:
        cap = 64 * 1024 * 1024
    limit = min(int(cap * 3 // 4), 96 * 1024 * 1024)
    budget = int(limit * 2 // 3)          # leave headroom for compiler scratch
    return limit, budget


def _pick_l1_tiling(L1, L2, H, tile_l1, alpha_bytes, budget):
    """Largest L1 tile whose double-buffered blocks fit the VMEM budget, then
    split L1 into equal tiles (multiple of 8 rows) to minimise last-tile pad."""
    resident = 2 * (H * L2 * 2      # y_proj^T bf16
                    + L2 * H * 4    # y f32
                    + L2 * 4        # mask bias f32
                    + H * H * 2     # W.T bf16
                    + H * 4)        # bias f32
    per_row = 2 * (H * 4                  # x tile f32
                   + L2 * alpha_bytes     # alpha out
                   + H * 4)               # matched out f32
    if budget > resident + 8 * per_row:
        max_rows = ((budget - resident) // per_row) // 8 * 8
    else:
        max_rows = 8
    tl1 = max(8, min(_round_up(tile_l1, 8), max_rows, _round_up(L1, 8)))
    n_tiles = -(-L1 // tl1)
    TL1 = _round_up(-(-L1 // n_tiles), 8)
    return TL1, n_tiles


def _seq_attn_kernel(x_ref, yprojt_ref, y_ref, maskb_ref, wt_ref, b_ref,
                     alpha_ref, out_ref):
    # x_ref:      (TL1, H)  f32   current L1 tile of batch element b
    # yprojt_ref: (H,   L2) bf16  relu(y @ W.T + b)^T, resident per batch
    # y_ref:      (L2,  H)  f32   raw y, resident per batch
    # maskb_ref:  (1,   L2) f32   additive mask bias (0 for real, -1e30 for pad)
    # wt_ref:     (H,   H)  bf16  W.T (shared Linear weight, pre-transposed)
    # b_ref:      (1,   H)  f32   Linear bias
    # alpha_ref:  (TL1, L2) out   (bf16 or f32)
    # out_ref:    (TL1, H)  f32   out (matched_seq)

    # relu(x @ W.T + b) for this tile: bf16 MXU operands, f32 accumulation.
    # Cast from f32 happens here (VPU filler) instead of a wrapper HBM pass.
    xp = jnp.dot(x_ref[...].astype(jnp.bfloat16), wt_ref[...],
                 preferred_element_type=jnp.float32)              # (TL1, H)
    xp = jnp.maximum(xp + b_ref[...], 0.0).astype(jnp.bfloat16)

    # scores = x_proj @ y_proj^T (y_proj already transposed -> plain dot).
    scores = jnp.dot(xp, yprojt_ref[...],
                     preferred_element_type=jnp.float32)          # (TL1, L2)
    scores = scores + maskb_ref[...]                              # masking

    # Softmax over L2 in f32 with exact normalisation.
    s_max = jnp.max(scores, axis=-1, keepdims=True)
    e = jnp.exp(scores - s_max)
    denom = jnp.sum(e, axis=-1, keepdims=True)
    alpha = e / denom                                             # (TL1, L2)

    alpha_bf = alpha.astype(jnp.bfloat16)
    if jnp.dtype(alpha_ref.dtype) == jnp.dtype(jnp.bfloat16):
        alpha_ref[...] = alpha_bf          # reuse the value fed to the matmul
    else:
        alpha_ref[...] = alpha.astype(alpha_ref.dtype)

    out_ref[...] = jnp.dot(alpha_bf, y_ref[...].astype(jnp.bfloat16),
                           preferred_element_type=jnp.float32)    # (TL1, H)


@functools.partial(jax.jit, static_argnames=("tile_l1", "alpha_dtype"))
def seq_attn_match(x, y, y_mask, weight, bias, *, tile_l1=256,
                   alpha_dtype=jnp.bfloat16):
    """
    Args:
      x:      (B, L1, H) float32
      y:      (B, L2, H) float32
      y_mask: (B, L2)    bool/int (1 for padding, 0 for true)
      weight: (H, H)     float32  (nn.Linear weight, row = output unit)
      bias:   (H,)       float32
      alpha_dtype: dtype of the returned attention matrix.  bf16 (default)
        halves the dominant HBM writeback; pass jnp.float32 for exact PyTorch
        output dtype.
    Returns:
      (alpha (B, L1, L2), matched_seq (B, L1, H) float32)
    """
    B, L1, H = x.shape
    _, L2, _ = y.shape

    x = x.astype(jnp.float32)
    y = y.astype(jnp.float32)

    alpha_bytes = jnp.dtype(alpha_dtype).itemsize
    vmem_limit, vmem_budget = _vmem_budget_bytes()
    TL1, n_l1 = _pick_l1_tiling(L1, L2, H, tile_l1, alpha_bytes, vmem_budget)
    L1p = TL1 * n_l1
    if L1p != L1:
        x = jnp.pad(x, ((0, 0), (0, L1p - L1), (0, 0)))

    wt_bf = weight.T.astype(jnp.bfloat16)           # kernel computes x @ W.T + b
    b2 = bias.reshape(1, H).astype(jnp.float32)

    # Hoisted shared projection of y (plain XLA batched matmul, bf16 operands /
    # f32 accumulation), pre-transposed to (B, H, L2) for the scores matmul.
    y_proj = jax.nn.relu(
        jnp.dot(y.astype(jnp.bfloat16), wt_bf,
                preferred_element_type=jnp.float32) + bias.astype(jnp.float32))
    y_proj_t = jnp.transpose(y_proj.astype(jnp.bfloat16), (0, 2, 1))

    # Additive mask bias: 0 for real tokens, -1e30 for padding (no NaN hazard;
    # fully-masked rows become uniform instead of NaN).
    mask_bias = (y_mask.astype(jnp.float32) * jnp.float32(-1e30)).reshape(B, 1, L2)

    grid_spec = pltpu.PrefetchScalarGridSpec(
        num_scalar_prefetch=0,
        grid=(B, n_l1),
        in_specs=[
            # x: one (TL1, H) tile per (b, l); leading batch dim squeezed away.
            pl.BlockSpec((pl.Squeezed(), TL1, H), lambda b, l: (b, l, 0)),
            # y_proj^T / y / mask bias: per-batch, resident across L1 tiles.
            pl.BlockSpec((pl.Squeezed(), H, L2), lambda b, l: (b, 0, 0)),
            pl.BlockSpec((pl.Squeezed(), L2, H), lambda b, l: (b, 0, 0)),
            pl.BlockSpec((pl.Squeezed(), 1, L2), lambda b, l: (b, 0, 0)),
            # W.T / bias: constant across the whole grid.
            pl.BlockSpec((H, H), lambda b, l: (0, 0)),
            pl.BlockSpec((1, H), lambda b, l: (0, 0)),
        ],
        out_specs=[
            pl.BlockSpec((pl.Squeezed(), TL1, L2), lambda b, l: (b, l, 0)),
            pl.BlockSpec((pl.Squeezed(), TL1, H), lambda b, l: (b, l, 0)),
        ],
    )

    alpha, matched = pl.pallas_call(
        _seq_attn_kernel,
        grid_spec=grid_spec,
        out_shape=(
            jax.ShapeDtypeStruct((B, L1p, L2), alpha_dtype),
            jax.ShapeDtypeStruct((B, L1p, H), jnp.float32),
        ),
        compiler_params=pltpu.CompilerParams(
            # y_proj is hoisted, so every (b, l) grid point is independent ->
            # both axes parallel (lets v7x shard either axis over its 2 TCs).
            dimension_semantics=("parallel", "parallel"),
            vmem_limit_bytes=vmem_limit,
        ),
    )(x, y_proj_t, y, mask_bias, wt_bf, b2)

    if L1p != L1:
        alpha = alpha[:, :L1]
        matched = matched[:, :L1]
    return alpha, matched


def seq_attn_match_ref(x, y, y_mask, weight, bias):
    """Pure-JAX reference mirroring the PyTorch forward with the same
    bf16-operand / f32-accumulation precision as the kernel."""
    wtb = weight.T.astype(jnp.bfloat16)
    b = bias.astype(jnp.float32)
    x_proj = jax.nn.relu(
        jnp.dot(x.astype(jnp.bfloat16), wtb, preferred_element_type=jnp.float32) + b)
    y_proj = jax.nn.relu(
        jnp.dot(y.astype(jnp.bfloat16), wtb, preferred_element_type=jnp.float32) + b)
    scores = jnp.einsum("bih,bjh->bij",
                        x_proj.astype(jnp.bfloat16), y_proj.astype(jnp.bfloat16),
                        preferred_element_type=jnp.float32)
    scores = jnp.where(y_mask[:, None, :].astype(bool), -jnp.inf, scores)
    alpha = jax.nn.softmax(scores, axis=-1)
    matched = jnp.einsum("bij,bjh->bih",
                         alpha.astype(jnp.bfloat16), y.astype(jnp.bfloat16),
                         preferred_element_type=jnp.float32)
    return alpha, matched


if __name__ == "__main__":
    # Small but lane-dense shapes (last dims = 128); L1=40 with tile_l1=16
    # exercises the multi-tile grid and the ragged-L1 padding path.
    B, L1, L2, H = 2, 40, 128, 128
    key = jax.random.PRNGKey(0)
    kx, ky, kw, kb = jax.random.split(key, 4)

    x = jax.random.normal(kx, (B, L1, H), dtype=jnp.float32)
    y = jax.random.normal(ky, (B, L2, H), dtype=jnp.float32)
    # Deterministic padding mask: last 5 positions of each y sequence are padding.
    y_mask = jnp.zeros((B, L2), dtype=jnp.int32).at[:, L2 - 5:].set(1)

    # Deterministic "nn.Linear(H, H)"-shaped parameters.
    weight = jax.random.normal(kw, (H, H), dtype=jnp.float32) * (1.0 / jnp.sqrt(H))
    bias = jax.random.normal(kb, (H,), dtype=jnp.float32) * 0.1

    alpha, matched = seq_attn_match(x, y, y_mask, weight, bias, tile_l1=16)
    jax.block_until_ready((alpha, matched))

    alpha32 = alpha.astype(jnp.float32)
    alpha_ref, matched_ref = seq_attn_match_ref(x, y, y_mask, weight, bias)

    assert alpha.shape == (B, L1, L2) and matched.shape == (B, L1, H)
    assert jnp.allclose(alpha32, alpha_ref, atol=5e-3, rtol=5e-3), (
        float(jnp.max(jnp.abs(alpha32 - alpha_ref))))
    assert jnp.allclose(matched, matched_ref, atol=7e-3, rtol=7e-3), (
        float(jnp.max(jnp.abs(matched - matched_ref))))
    # Masked positions get (numerically) zero attention; rows sum to 1
    # (to within bf16 alpha quantisation).
    assert float(jnp.max(alpha32[:, :, L2 - 5:])) == 0.0
    assert jnp.allclose(jnp.sum(alpha32, axis=-1), 1.0, atol=5e-3)

    print("KERNEL_OK")
</pallas_src>

<mosaic_0001>
module attributes {stable_mosaic.version = 11 : i64} {
  func.func @_seq_attn_kernel(%arg0: i32, %arg1: i32, %arg2: memref<1x16x128xf32, #tpu.memory_space<vmem>>, %arg3: memref<1x128x128xbf16, #tpu.memory_space<vmem>>, %arg4: memref<1x128x128xf32, #tpu.memory_space<vmem>>, %arg5: memref<1x1x128xf32, #tpu.memory_space<vmem>>, %arg6: memref<128x128xbf16, #tpu.memory_space<vmem>>, %arg7: memref<1x128xf32, #tpu.memory_space<vmem>>, %arg8: memref<1x16x128xbf16, #tpu.memory_space<vmem>>, %arg9: memref<1x16x128xf32, #tpu.memory_space<vmem>>) attributes {dimension_semantics = [#tpu.dimension_semantics<parallel>, #tpu.dimension_semantics<parallel>], iteration_bounds = array<i64: 2, 3>, scalar_prefetch = 0 : i64, scratch_operands = 0 : i64, tpu.core_type = #tpu.core_type<tc>, window_params = [{transform_indices = @transform_0, window_bounds = array<i64: 1, 16, 128>}, {transform_indices = @transform_1, window_bounds = array<i64: 1, 128, 128>}, {transform_indices = @transform_2, window_bounds = array<i64: 1, 128, 128>}, {transform_indices = @transform_3, window_bounds = array<i64: 1, 1, 128>}, {pipeline_mode = #tpu.pipeline_mode<synchronous>, transform_indices = @transform_4, window_bounds = array<i64: 128, 128>}, {pipeline_mode = #tpu.pipeline_mode<synchronous>, transform_indices = @transform_5, window_bounds = array<i64: 1, 128>}, {transform_indices = @transform_6, window_bounds = array<i64: 1, 16, 128>}, {transform_indices = @transform_7, window_bounds = array<i64: 1, 16, 128>}]} {
    %c0 = arith.constant 0 : index
    %c0_0 = arith.constant 0 : index
    %c0_1 = arith.constant 0 : index
    %0 = vector.load %arg2[%c0, %c0_0, %c0_1] : memref<1x16x128xf32, #tpu.memory_space<vmem>>, vector<1x16x128xf32>
    %1 = vector.shape_cast %0 : vector<1x16x128xf32> to vector<16x128xf32>
    %2 = arith.truncf %1 : vector<16x128xf32> to vector<16x128xbf16>
    %c0_2 = arith.constant 0 : index
    %c0_3 = arith.constant 0 : index
    %3 = vector.load %arg6[%c0_2, %c0_3] : memref<128x128xbf16, #tpu.memory_space<vmem>>, vector<128x128xbf16>
    %cst = arith.constant dense<0.000000e+00> : vector<16x128xf32>
    %4 = tpu.matmul %2, %3, %cst {dimension_numbers = #tpu.dot_dimension_numbers<[1], [0], [0], [1], [0, 0, 1, 1], [], []>} : vector<16x128xbf16>, vector<128x128xbf16>, vector<16x128xf32> -> vector<16x128xf32>
    %c0_4 = arith.constant 0 : index
    %c0_5 = arith.constant 0 : index
    %5 = vector.load %arg7[%c0_4, %c0_5] : memref<1x128xf32, #tpu.memory_space<vmem>>, vector<1x128xf32>
    %6 = vector.broadcast %5 : vector<1x128xf32> to vector<16x128xf32>
    %7 = arith.addf %4, %6 : vector<16x128xf32>
    %cst_6 = arith.constant 0.000000e+00 : f32
    %8 = vector.broadcast %cst_6 : f32 to vector<16x128xf32>
    %9 = arith.maximumf %7, %8 : vector<16x128xf32>
    %10 = arith.truncf %9 : vector<16x128xf32> to vector<16x128xbf16>
    %c0_7 = arith.constant 0 : index
    %c0_8 = arith.constant 0 : index
    %c0_9 = arith.constant 0 : index
    %11 = vector.load %arg3[%c0_7, %c0_8, %c0_9] : memref<1x128x128xbf16, #tpu.memory_space<vmem>>, vector<1x128x128xbf16>
    %12 = vector.shape_cast %11 : vector<1x128x128xbf16> to vector<128x128xbf16>
    %cst_10 = arith.constant dense<0.000000e+00> : vector<16x128xf32>
    %13 = tpu.matmul %10, %12, %cst_10 {dimension_numbers = #tpu.dot_dimension_numbers<[1], [0], [0], [1], [0, 0, 1, 1], [], []>} : vector<16x128xbf16>, vector<128x128xbf16>, vector<16x128xf32> -> vector<16x128xf32>
    %c0_11 = arith.constant 0 : index
    %c0_12 = arith.constant 0 : index
    %c0_13 = arith.constant 0 : index
    %14 = vector.load %arg5[%c0_11, %c0_12, %c0_13] : memref<1x1x128xf32, #tpu.memory_space<vmem>>, vector<1x1x128xf32>
    %15 = vector.shape_cast %14 : vector<1x1x128xf32> to vector<1x128xf32>
    %16 = vector.broadcast %15 : vector<1x128xf32> to vector<16x128xf32>
    %17 = arith.addf %13, %16 : vector<16x128xf32>
    %cst_14 = arith.constant dense<0xFF800000> : vector<16xf32>
    %18 = vector.multi_reduction <maximumf>, %17, %cst_14 [1] : vector<16x128xf32> to vector<16xf32>
    %19 = vector.shape_cast %18 : vector<16xf32> to vector<16x1xf32>
    %20 = vector.broadcast %19 : vector<16x1xf32> to vector<16x128xf32>
    %21 = arith.subf %17, %20 : vector<16x128xf32>
    %22 = math.exp %21 : vector<16x128xf32>
    %cst_15 = arith.constant dense<0.000000e+00> : vector<16xf32>
    %23 = vector.multi_reduction <add>, %22, %cst_15 [1] : vector<16x128xf32> to vector<16xf32>
    %24 = vector.shape_cast %23 : vector<16xf32> to vector<16x1xf32>
    %25 = vector.broadcast %24 : vector<16x1xf32> to vector<16x128xf32>
    %26 = arith.divf %22, %25 : vector<16x128xf32>
    %27 = arith.truncf %26 : vector<16x128xf32> to vector<16x128xbf16>
    %c0_16 = arith.constant 0 : index
    %c0_17 = arith.constant 0 : index
    %c0_18 = arith.constant 0 : index
    %28 = vector.load %arg8[%c0_16, %c0_17, %c0_18] : memref<1x16x128xbf16, #tpu.memory_space<vmem>>, vector<1x16x128xbf16>
    %29 = vector.shape_cast %28 : vector<1x16x128xbf16> to vector<16x128xbf16>
    %30 = vector.shape_cast %27 : vector<16x128xbf16> to vector<1x16x128xbf16>
    tpu.vector_store %arg8[%c0_16, %c0_17, %c0_18], %30 {strides = array<i32>} : memref<1x16x128xbf16, #tpu.memory_space<vmem>>, vector<1x16x128xbf16>,
    %c0_19 = arith.constant 0 : index
    %c0_20 = arith.constant 0 : index
    %c0_21 = arith.constant 0 : index
    %31 = vector.load %arg4[%c0_19, %c0_20, %c0_21] : memref<1x128x128xf32, #tpu.memory_space<vmem>>, vector<1x128x128xf32>
    %32 = vector.shape_cast %31 : vector<1x128x128xf32> to vector<128x128xf32>
    %33 = arith.truncf %32 : vector<128x128xf32> to vector<128x128xbf16>
    %cst_22 = arith.constant dense<0.000000e+00> : vector<16x128xf32>
    %34 = tpu.matmul %27, %33, %cst_22 {dimension_numbers = #tpu.dot_dimension_numbers<[1], [0], [0], [1], [0, 0, 1, 1], [], []>} : vector<16x128xbf16>, vector<128x128xbf16>, vector<16x128xf32> -> vector<16x128xf32>
    %c0_23 = arith.constant 0 : index
    %c0_24 = arith.constant 0 : index
    %c0_25 = arith.constant 0 : index
    %35 = vector.load %arg9[%c0_23, %c0_24, %c0_25] : memref<1x16x128xf32, #tpu.memory_space<vmem>>, vector<1x16x128xf32>
    %36 = vector.shape_cast %35 : vector<1x16x128xf32> to vector<16x128xf32>
    %37 = vector.shape_cast %34 : vector<16x128xf32> to vector<1x16x128xf32>
    tpu.vector_store %arg9[%c0_23, %c0_24, %c0_25], %37 {strides = array<i32>} : memref<1x16x128xf32, #tpu.memory_space<vmem>>, vector<1x16x128xf32>,
    return
  }
  func.func @transform_0(%arg0: i32, %arg1: i32) -> (i32, i32, i32) {
    %c0_i32 = arith.constant 0 : i32
    %c0_i32_0 = arith.constant 0 : i32
    return %arg0, %arg1, %c0_i32 : i32, i32, i32
  }
  func.func @transform_1(%arg0: i32, %arg1: i32) -> (i32, i32, i32) {
    %c0_i32 = arith.constant 0 : i32
    %c0_i32_0 = arith.constant 0 : i32
    %c0_i32_1 = arith.constant 0 : i32
    return %arg0, %c0_i32, %c0_i32_0 : i32, i32, i32
  }
  func.func @transform_2(%arg0: i32, %arg1: i32) -> (i32, i32, i32) {
    %c0_i32 = arith.constant 0 : i32
    %c0_i32_0 = arith.constant 0 : i32
    %c0_i32_1 = arith.constant 0 : i32
    return %arg0, %c0_i32, %c0_i32_0 : i32, i32, i32
  }
  func.func @transform_3(%arg0: i32, %arg1: i32) -> (i32, i32, i32) {
    %c0_i32 = arith.constant 0 : i32
    %c0_i32_0 = arith.constant 0 : i32
    %c0_i32_1 = arith.constant 0 : i32
    return %arg0, %c0_i32, %c0_i32_0 : i32, i32, i32
  }
  func.func @transform_4(%arg0: i32, %arg1: i32) -> (i32, i32) {
    %c0_i32 = arith.constant 0 : i32
    %c0_i32_0 = arith.constant 0 : i32
    %c0_i32_1 = arith.constant 0 : i32
    return %c0_i32, %c0_i32_0 : i32, i32
  }
  func.func @transform_5(%arg0: i32, %arg1: i32) -> (i32, i32) {
    %c0_i32 = arith.constant 0 : i32
    %c0_i32_0 = arith.constant 0 : i32
    %c0_i32_1 = arith.constant 0 : i32
    return %c0_i32, %c0_i32_0 : i32, i32
  }
  func.func @transform_6(%arg0: i32, %arg1: i32) -> (i32, i32, i32) {
    %c0_i32 = arith.constant 0 : i32
    %c0_i32_0 = arith.constant 0 : i32
    return %arg0, %arg1, %c0_i32 : i32, i32, i32
  }
  func.func @transform_7(%arg0: i32, %arg1: i32) -> (i32, i32, i32) {
    %c0_i32 = arith.constant 0 : i32
    %c0_i32_0 = arith.constant 0 : i32
    return %arg0, %arg1, %c0_i32 : i32, i32, i32
  }
}

</mosaic_0001>

<bundles_post_ra>
// kernel: seq_attn_match.1
= control target key start
LH: loop header
LB: loop body
LE: loop exit
PB: predicated region body
PF: predicated region fallthrough
CT: control target
= control target key end

     0   :  { %s1177_s24 = smov 0   ;;  %s1179_s25 = smov 0   ;;  %s1342_s0 = inlined_call_operand.vmem [shape: f32[2,48,128], index: 0, kind: input, shape index: {}]   ;;  %s1343_s1 = inlined_call_operand.vmem [shape: bf16[2,128,128], index: 1, kind: input, shape index: {}]   ;;  %s1344_s2 = inlined_call_operand.vmem [shape: f32[2,128,128], index: 2, kind: input, shape index: {}]   ;;  %s1345_s3 = inlined_call_operand.vmem [shape: f32[2,1,128], index: 3, kind: input, shape index: {}]   ;;  %s1346_s4 = inlined_call_operand.vmem [shape: bf16[128,128], index: 4, kind: input, shape index: {}]   ;;  %s1347_s5 = inlined_call_operand.vmem [shape: f32[1,128], index: 5, kind: input, shape index: {}]   ;;  %s1348_s6 = inlined_call_operand.vmem [shape: bf16[2,48,128], index: 6, kind: output, shape index: {0}]   ;;  %s1349_s7 = inlined_call_operand.vmem [shape: f32[2,48,128], index: 7, kind: output, shape index: {1}]  }
   0x1   :  { %s1181_s26 = smov 0   ;;  %s1183_s27 = smov 0  }
   0x2   :  { %s1185_s28 = smov 0  }
   0x3 LB: > { %s27_s29 = sadd.s32 1, %s1125_s26  ;;  %s30_s30 = sadd.s32 1, %s1129_s27  ;;  %s1133_s28 = sphi %s1185_s28, %s18_s28   ;;  %s1129_s27 = sphi %s1183_s27, %s1353_s27   ;;  %s1125_s26 = sphi %s1181_s26, %s1352_s26   ;;  %s1121_s25 = sphi %s1179_s25, %s1351_s25   ;;  %s1117_s24 = sphi %s1177_s24, %s1350_s24  }
   0x4   : > { %p28_p0 = scmp.ge.s32.totalorder %s27_s29, 3  ;;  %p899_p1 = scmp.ge.s32.totalorder %s1133_s28, 1 }
   0x5   : > { %p291_p2 = scmp.lt.s32.totalorder %s1133_s28, 7 }
   0x6   : > { %s1355_s29 = smov (%p28_p0, %s27_s29), 0  ;;  %s1357_s30 = smov (!%p28_p0, %s30_s30), %s1129_s27 }
   0x7   : > { %p292_p3 = pnand %p899_p1, %p291_p2  ;;  %p32_p4 = scmp.ge.s32.totalorder %s1357_s30, 2 }
   0x8   : > { %v1071_v0 = vld [vmem:[%s1346_s4] sm:$0xff] (!%p292_p3)   ;;  %v1135_v1 = vmov (!%p292_p3), 0.0   ;;  %v1072_v2 = vld [vmem:[%s1346_s4 + $0x8] sm:$0xff] (!%p292_p3)   ;;  %vm1136_vm0 = vmmov (!%p292_p3), 0   ;;  %p354_p5 = scmp.lt.s32.totalorder (!%p292_p3), %s1121_s25, 1  ;;  %s900_s12 = sshll.u32 (!%p292_p3), %s1117_s24, 1 }
   0x9   : > { %s1359_s30 = smov (%p32_p4, %s1357_s30), 0  ;;  %295 = sbr.rel (%p292_p3) target bundleno = 1009 (0x3f1), region = 44 }
   0xa   : > { %968 = vmatprep.subr.bf16.mxu0 (!%p292_p3), %v1135_v1  ;;  %988 = vmatprep.subr.bf16.mxu1 (!%p292_p3), %v1135_v1  ;;  %v1073_v3 = vld [vmem:[%s1346_s4 + $0x10] sm:$0xff] (!%p292_p3)   ;;  %p356_p6 = scmp.lt.s32.totalorder (!%p292_p3), %s900_s12, 5  ;;  %v1074_v4 = vld [vmem:[%s1346_s4 + $0x18] sm:$0xff] (!%p292_p3)   ;;  %v1075_v7 = vld [vmem:[%s1346_s4 + $0x20] sm:$0xff] (!%p292_p3)  }
   0xb   : > { %969 = vmatpush3.bf16.msra.mxu0 (!%p292_p3), %v1071_v0  ;;  %984 = vmatprep.mubr.msk.bf16.mxu0 (!%p292_p3), %vm1136_vm0, %v1135_v1  ;;  %v1076_v9 = vld [vmem:[%s1346_s4 + $0x28] sm:$0xff] (!%p292_p3)   ;;  %v1077_v11 = vld [vmem:[%s1346_s4 + $0x30] sm:$0xff] (!%p292_p3)   ;;  %v1078_v13 = vld [vmem:[%s1346_s4 + $0x38] sm:$0xff] (!%p292_p3)  }
   0xc   : > { %970 = vmatprep.subr.bf16.mxu0 (!%p292_p3), %v1135_v1  ;;  %1004 = vmatprep.mubr.msk.bf16.mxu1 (!%p292_p3), %vm1136_vm0, %v1135_v1  ;;  %v910_v20 = vld [vmem:[%s1347_s5] ss:$0 sm:$0xff] (!%p292_p3) }
   0xf   : > { %971 = vmatpush3.bf16.msra.mxu0 (!%p292_p3), %v1072_v2 }
  0x10   : > { %s1361_s25 = smov (!%p354_p5, %s1121_s25), 1  ;;  %972 = vmatprep.subr.bf16.mxu0 %v1135_v1  ;;  %s1363_s12 = smov (!%p356_p6, %s900_s12), 5 }
  0x11   : > { %s932_s15 = sshll.u32 %s1361_s25, 6  ;;  %s1028_s21 = smul.u32 6, %s1361_s25 }
  0x12   : > { %s1236_s20 = scalar_lea.vmem %s1343_s1, %s932_s15  ;;  %s933_s23 = sshll.u32 %s1361_s25, 7 }
  0x13   : > { %973 = vmatpush3.bf16.msra.mxu0 %v1073_v3  ;;  %v1079_v5 = vld [vmem:[%s1236_s20] sm:$0xff]   ;;  %v1080_v6 = vld [vmem:[%s1236_s20 + $0x8] sm:$0xff]   ;;  %v1081_v8 = vld [vmem:[%s1236_s20 + $0x10] sm:$0xff]   ;;  %s1248_s24 = sadd.s32 %s1028_s21, %s1363_s12  ;;  %s1293_s11 = scalar_lea.vmem %s1344_s2, %s933_s23 }
  0x14   : > { %974 = vmatprep.subr.bf16.mxu0 %v1135_v1  ;;  %989 = vmatpush3.bf16.msra.mxu1 %v1079_v5  ;;  %s901_s10 = sshll.u32 %s1248_s24, 3  ;;  %v1082_v10 = vld [vmem:[%s1236_s20 + $0x18] sm:$0xff]   ;;  %v1083_v12 = vld [vmem:[%s1236_s20 + $0x20] sm:$0xff]   ;;  %v1084_v16 = vld [vmem:[%s1236_s20 + $0x28] sm:$0xff]  }
  0x15   : > { %990 = vmatprep.subr.bf16.mxu1 %v1135_v1  ;;  %s361_s15 = scalar_lea.vmem %s1342_s0, %s901_s10  ;;  %v1085_v18 = vld [vmem:[%s1236_s20 + $0x30] sm:$0xff]   ;;  %v1086_v19 = vld [vmem:[%s1236_s20 + $0x38] sm:$0xff]   ;;  %s375_s20 = scalar_lea.vmem %s1345_s3, %s1361_s25  ;;  %v655_v37 = vld [vmem:[%s1293_s11] sm:$0xff] }
  0x16   : > { %v397_v14 = vld [vmem:[%s361_s15] sm:$0xff]  ;;  %v398_v15 = vld [vmem:[%s361_s15 + $0x8] sm:$0xff]  ;;  %v657_v39 = vld [vmem:[%s1293_s11 + $0x10] sm:$0xff]  ;;  %s907_s25 = sshll.u32 %s1248_s24, 2  ;;  %s394_s17 = scalar_lea.vmem %s1349_s7, %s901_s10 }
  0x17   : > { %975 = vmatpush3.bf16.msra.mxu0 %v1074_v4  ;;  %v399_v17 = vpack.c.bf16 %v398_v15, %v397_v14  ;;  %v919_v30 = vld [vmem:[%s375_s20] ss:$0 sm:$0xff]  ;;  %v656_v38 = vld [vmem:[%s1293_s11 + $0x8] sm:$0xff]  ;;  %v658_v41 = vld [vmem:[%s1293_s11 + $0x18] sm:$0xff]  ;;  %s384_s14 = scalar_lea.vmem %s1348_s6, %s907_s25 }
  0x18   : > { %976 = vmatprep.subr.bf16.mxu0 %v1135_v1  ;;  %991 = vmatpush3.bf16.msra.mxu1 %v1080_v6  ;;  %v671_v40 = vpack.c.bf16 %v656_v38, %v655_v37  ;;  %v672_v42 = vpack.c.bf16 %v658_v41, %v657_v39  ;;  %v659_v43 = vld [vmem:[%s1293_s11 + $0x20] sm:$0xff]  ;;  %v660_v44 = vld [vmem:[%s1293_s11 + $0x28] sm:$0xff]  ;;  %v661_v54 = vld [vmem:[%s1293_s11 + $0x30] sm:$0xff] }
  0x19   : > { %992 = vmatprep.subr.bf16.mxu1 %v1135_v1  ;;  %v673_v45 = vpack.c.bf16 %v660_v44, %v659_v43  ;;  %v662_v55 = vld [vmem:[%s1293_s11 + $0x38] sm:$0xff]  ;;  %v663_v57 = vld [vmem:[%s1293_s11 + $0x40] sm:$0xff]  ;;  %v664_v58 = vld [vmem:[%s1293_s11 + $0x48] sm:$0xff] }
  0x1a   : > { %v674_v56 = vpack.c.bf16 %v662_v55, %v661_v54  ;;  %v675_v59 = vpack.c.bf16 %v664_v58, %v663_v57  ;;  %v665_v60 = vld [vmem:[%s1293_s11 + $0x50] sm:$0xff]  ;;  %v666_v61 = vld [vmem:[%s1293_s11 + $0x58] sm:$0xff]  ;;  %v667_v63 = vld [vmem:[%s1293_s11 + $0x60] sm:$0xff] }
  0x1b   : > { %977 = vmatpush3.bf16.msra.mxu0 %v1075_v7  ;;  %v676_v62 = vpack.c.bf16 %v666_v61, %v665_v60  ;;  %v668_v0 = vld [vmem:[%s1293_s11 + $0x68] sm:$0xff]  ;;  %v669_v3 = vld [vmem:[%s1293_s11 + $0x70] sm:$0xff]  ;;  %v670_v4 = vld [vmem:[%s1293_s11 + $0x78] sm:$0xff] }
  0x1c   : > { %978 = vmatprep.subr.bf16.mxu0 %v1135_v1  ;;  %993 = vmatpush3.bf16.msra.mxu1 %v1081_v8  ;;  %v677_v2 = vpack.c.bf16 %v668_v0, %v667_v63  ;;  %v678_v5 = vpack.c.bf16 %v670_v4, %v669_v3 }
  0x1d   : > { %994 = vmatprep.subr.bf16.mxu1 %v1135_v1 }
  0x1f   : > { %979 = vmatpush3.bf16.msra.mxu0 %v1076_v9 }
  0x20   : > { %980 = vmatprep.subr.bf16.mxu0 %v1135_v1  ;;  %995 = vmatpush3.bf16.msra.mxu1 %v1082_v10 }
  0x21   : > { %996 = vmatprep.subr.bf16.mxu1 %v1135_v1 }
  0x23   : > { %981 = vmatpush3.bf16.msra.mxu0 %v1077_v11 }
  0x24   : > { %982 = vmatprep.subr.bf16.mxu0 %v1135_v1  ;;  %997 = vmatpush3.bf16.msra.mxu1 %v1083_v12 }
  0x25   : > { %998 = vmatprep.subr.bf16.mxu1 %v1135_v1 }
  0x27   : > { %983 = vmatpush3.bf16.msra.mxu0 %v1078_v13 }
  0x28   : > { %1008 = vmatprep.subr.bf16.mxu0 %v1135_v1  ;;  %999 = vmatpush3.bf16.msra.mxu1 %v1084_v16 }
  0x29   : > { %1000 = vmatprep.subr.bf16.mxu1 %v1135_v1 }
  0x2a   : > { %985 = vmatmul.mubr.bf16.vlgmr.msra.gmra.mrb[0].mxu0 %v399_v17 }
  0x2b   : > { %1024 = vmatprep.mubr.msk.bf16.mxu0 %vm1136_vm0, %v1135_v1  ;;  %1009 = vmatpush3.bf16.msra.mxu0 %v671_v40 }
  0x2c   : > { %1001 = vmatpush3.bf16.msra.mxu1 %v1085_v18  ;;  %1010 = vmatprep.subr.bf16.mxu0 %v1135_v1 }
  0x2d   : > { %1002 = vmatprep.subr.bf16.mxu1 %v1135_v1 }
  0x2f   : > { %1011 = vmatpush3.bf16.msra.mxu0 %v672_v42 }
  0x30   : > { %1003 = vmatpush3.bf16.msra.mxu1 %v1086_v19  ;;  %1012 = vmatprep.subr.bf16.mxu0 %v1135_v1 }
  0x33   : > { %1013 = vmatpush3.bf16.msra.mxu0 %v673_v45 }
  0x34   : > { %1014 = vmatprep.subr.bf16.mxu0 %v1135_v1 }
  0x37   : > { %1015 = vmatpush3.bf16.msra.mxu0 %v674_v56 }
  0x38   : > { %1016 = vmatprep.subr.bf16.mxu0 %v1135_v1 }
  0x3b   : > { %1017 = vmatpush3.bf16.msra.mxu0 %v675_v59 }
  0x3c   : > { %1018 = vmatprep.subr.bf16.mxu0 %v1135_v1 }
  0x3f   : > { %1019 = vmatpush3.bf16.msra.mxu0 %v676_v62 }
  0x40   : > { %1020 = vmatprep.subr.bf16.mxu0 %v1135_v1 }
  0x43   : > { %1021 = vmatpush3.bf16.msra.mxu0 %v677_v2 }
  0x44   : > { %1022 = vmatprep.subr.bf16.mxu0 %v1135_v1 }
  0x47   : > { %1023 = vmatpush3.bf16.msra.mxu0 %v678_v5 }
  0xfd   : > { %v505_v21 = vpop.f32.mrb[0].mxu0 }
  0xfe   : > { %v506_v22 = vadd.f32 %v910_v20, %v505_v21  ;;  %v986_v23 = vpop.f32.mrb[1].mxu0 }
  0xff   : > { %v508_v24 = vpop.f32.mrb[2].mxu0 }
 0x100   : > { %v509_v25 = vadd.f32 %v910_v20, %v508_v24  ;;  %v987_v26 = vpop.f32.mrb[3].mxu0  ;;  %v512_v27 = vmax.f32 %v506_v22, 0.0 }
 0x102   : > { %v513_v28 = vmax.f32 %v509_v25, 0.0 }
 0x104   : > { %v514_v29 = vpack.c.bf16 %v513_v28, %v512_v27 }
 0x106   : > { %1005 = vmatmul.mubr.bf16.vlgmr.msra.gmra.mrb[0].mxu1 %v514_v29 }
 0x1d9   : > { %v620_v31 = vpop.f32.mrb[0].mxu1 }
 0x1da   : > { %v621_v32 = vadd.f32 %v919_v30, %v620_v31  ;;  %v1006_v33 = vpop.f32.mrb[1].mxu1 }
 0x1db   : > { %v623_v34 = vpop.f32.mrb[2].mxu1 }
 0x1dc   : > { %627 = vmax.xlane.f32.xlu0 %v621_v32  ;;  %v1007_v35 = vpop.f32.mrb[3].mxu1  ;;  %v624_v36 = vadd.f32 %v919_v30, %v623_v34 }
 0x1e0   : > { %629 = vmax.xlane.f32.xlu0 %v624_v36 }
 0x269   : > { %v628_v46 = vpop.xlane.xlu0 %627 }
 0x26a   : > { %v631_v47 = vsub.f32 %v621_v32, %v628_v46 }
 0x26c   : > { %v633_v48 = vmul.f32 1.442695, %v631_v47 }
 0x26d   : > { %v630_v49 = vpop.xlane.xlu0 %629 }
 0x26e   : > { %1087 = vpow2.f32 %v633_v48  ;;  %v632_v50 = vsub.f32 %v624_v36, %v630_v49 }
 0x270   : > { %v635_v51 = vmul.f32 1.442695, %v632_v50 }
 0x272   : > { %1089 = vpow2.f32 %v635_v51 }
 0x278   : > { %v1088_v52 = vpop.eup %1087 }
 0x279   : > { %637 = vadd.xlane.f32.xlu1 %v1088_v52 }
 0x27c   : > { %v1090_v53 = vpop.eup %1089 }
 0x27d   : > { %639 = vadd.xlane.f32.xlu1 %v1090_v53 }
 0x306   : > { %v638_v6 = vpop.xlane.xlu1 %637 }
 0x307   : > { %1091 = vrcp.f32 %v638_v6 }
 0x30a   : > { %v640_v7 = vpop.xlane.xlu1 %639 }
 0x30b   : > { %1093 = vrcp.f32 %v640_v7 }
 0x311   : > { %v1092_v8 = vpop.eup %1091 }
 0x312   : > { %v642_v10 = vmul.f32 %v1092_v8, %v1088_v52 }
 0x315   : > { %v1094_v9 = vpop.eup %1093 }
 0x316   : > { %v644_v11 = vmul.f32 %v1094_v9, %v1090_v53 }
 0x318   : > { %v645_v12 = vpack.c.bf16 %v644_v11, %v642_v10 }
 0x31a   : > { %940 = vst [vmem:[%s384_s14] sm:$0xff] %v645_v12   ;;  %1025 = vmatmul.mubr.bf16.vlgmr.msra.gmra.mrb[4].mxu0 %v645_v12 }
 0x3ed   : > { %v713_v1 = vpop.f32.mrb[4].mxu0 }
 0x3ee   : > { %720 = vst [vmem:[%s394_s17] sm:$0xff] %v713_v1  ;;  %v1026_v13 = vpop.f32.mrb[5].mxu0 }
 0x3ef   : > { %v716_v14 = vpop.f32.mrb[6].mxu0 }
 0x3f0   : > { %721 = vst [vmem:[%s394_s17 + $0x8] sm:$0xff] %v716_v14  ;;  %v1027_v15 = vpop.f32.mrb[7].mxu0 }
 0x3f1 PF: > { %s18_s28 = sadd.s32 1, %s1133_s28   ;;  %s1350_s24 = smov %s1125_s26 }
 0x3f2   : > { %p15_p7 = scmp.ge.s32.totalorder %s18_s28, 8   ;;  %s1351_s25 = smov %s1129_s27 }
 0x3f3   : > { %s1352_s26 = smov %s1355_s29  ;;  %s1353_s27 = smov %s1359_s30 }
 0x3f4   :  { %17 = sbr.rel (!%p15_p7) target bundleno = 3 (0x3), region = 95 }

</bundles_post_ra>
